<compile_context>
chip_gen: v6e
topology: v6e:2x2x1
jax: 0.10.0
libtpu: 0.0.40
codegen_flags: <defaults>
</compile_context>

<pallas_src>
import functools
import math

import jax
import jax.numpy as jnp
import numpy as np
from jax import lax
from jax.experimental import pallas as pl
from jax.experimental.pallas import tpu as pltpu

GROUPS = 32
EPS = 1e-5


# ---------------------------------------------------------------------------
# Kernel 1: GroupNorm apply + fused QKV projection, once per (batch, HW tile).
# Writes Q (B, HW, C), K pre-transposed (B, C, HW) and V (B, HW, C) so the flash
# kernel never recomputes projections and never transposes K per k-tile.
# ---------------------------------------------------------------------------
def qkv_project_kernel(x_ref, ss_ref, wqkv_ref, bqkv_ref,
                       q_ref, kT_ref, v_ref, *, sm_scale):
    c = x_ref.shape[-1]
    cdt = wqkv_ref.dtype                                       # MXU compute dtype

    ss = ss_ref[0]                                             # (2, C) f32
    xn = (x_ref[0] * ss[0:1, :] + ss[1:2, :]).astype(cdt)      # GroupNorm apply (f32 math)

    # One fused (thw, C) @ (C, 3C) matmul for Q/K/V; bias added in f32.
    qkv = jnp.dot(xn, wqkv_ref[...],
                  preferred_element_type=jnp.float32) + bqkv_ref[...]
    q = qkv[:, :c] * sm_scale           # fold 1/sqrt(C) into Q in f32, before the cast
    k = qkv[:, c:2 * c]
    v = qkv[:, 2 * c:]

    q_ref[0] = q.astype(q_ref.dtype)
    kT_ref[0] = k.T.astype(kT_ref.dtype)   # single transpose per HW tile (not per q/k pair)
    v_ref[0] = v.astype(v_ref.dtype)


# ---------------------------------------------------------------------------
# Kernel 2: flash attention over precomputed Q / K^T / V (online softmax over key
# tiles) + output projection + residual add.
# Grid (B, n_q_tiles, n_k_tiles); the key-tile axis is the reduction axis.
# ---------------------------------------------------------------------------
def attn_flash_kernel(xr_ref, q_ref, kT_ref, v_ref, wo_ref, bo_ref,
                      o_ref, acc_sc, m_sc, l_sc):
    ki = pl.program_id(2)

    @pl.when(ki == 0)
    def _init():
        m_sc[...] = jnp.full_like(m_sc, -jnp.inf)
        l_sc[...] = jnp.zeros_like(l_sc)
        acc_sc[...] = jnp.zeros_like(acc_sc)

    # Scores: plain (tq, C) @ (C, tk) MXU contraction (K is already transposed in HBM).
    s = jnp.dot(q_ref[0], kT_ref[0], preferred_element_type=jnp.float32)

    # Online softmax; normalization deferred to the epilogue.  Stats stay f32 (v5e-safe).
    m_new = jnp.maximum(m_sc[...], jnp.max(s, axis=-1, keepdims=True))
    alpha = jnp.exp(m_sc[...] - m_new)
    p = jnp.exp(s - m_new)
    l_sc[...] = alpha * l_sc[...] + jnp.sum(p, axis=-1, keepdims=True)
    acc_sc[...] = alpha * acc_sc[...] + jnp.dot(p.astype(v_ref.dtype), v_ref[0],
                                                preferred_element_type=jnp.float32)
    m_sc[...] = m_new

    @pl.when(ki == pl.num_programs(2) - 1)
    def _finalize():
        attn = acc_sc[...] * pl.reciprocal(l_sc[...], approx=True)
        out = jnp.dot(attn.astype(wo_ref.dtype), wo_ref[...],
                      preferred_element_type=jnp.float32) + bo_ref[...]
        o_ref[0] = out + xr_ref[0]                             # residual (f32)


# ---------------------------------------------------------------------------
# Wrapper
# ---------------------------------------------------------------------------
def _pick_tile(n, cap, align):
    """Largest tile t <= cap with n % t == 0 and t % align == 0 (or t == n)."""
    if n <= cap:
        return n
    if n % align != 0:
        # TODO(synk): pad HW to a multiple of `align` instead of one huge full-size tile.
        return n
    t = max(align, cap - (cap % align))
    while n % t != 0:
        t -= align
    return t


def _vmem_cap_bytes():
    try:
        return int(pltpu.get_tpu_info().vmem_capacity_bytes)
    except Exception:
        return 128 << 20


def _clamp_vmem(est, cap):
    hi = (cap * 3) // 4          # ~96 MiB on 128 MiB parts (v5e/v6e), ~48 MiB on 64 MiB v7x
    return int(min(max(est, 16 << 20), hi))


def attention_block(x_nchw, params, *, matmul_dtype=jnp.bfloat16,
                    q_tile=None, k_tile=None, proj_tile=None):
    """x_nchw: (B, C, H, W) float32.  Returns (B, C, H, W) float32."""
    b, c, h, w = x_nchw.shape
    hw = h * w
    assert c % GROUPS == 0, "GroupNorm(32, C) requires C % 32 == 0"
    # TODO(synk): pad C to a multiple of 128 for lane-dense MXU/store use when C % 128 != 0.
    cg = c // GROUPS
    wb = jnp.dtype(matmul_dtype).itemsize
    f32 = 4

    cap = _vmem_cap_bytes()
    big_vmem = cap >= (100 << 20)           # v5e / v6e (128 MiB) vs v7x (64 MiB per core)
    if q_tile is None:
        q_tile = 512 if big_vmem else 256
    if k_tile is None:
        k_tile = 1024 if big_vmem else 512
        if (not big_vmem) and c >= 1024:
            k_tile = 256                    # keep the (tq, tk) temps small on 64 MiB v7x
    if proj_tile is None:
        proj_tile = 1024 if big_vmem else 512

    gamma, beta = params["gamma"], params["beta"]
    w_in, b_in = params["w_in"], params["b_in"]
    w_out, b_out = params["w_out"], params["b_out"]

    # ---- GroupNorm statistics in plain XLA (mean-subtracted variance; fuses with glue) ----
    xg = x_nchw.reshape(b, GROUPS, cg, h, w).astype(jnp.float32)
    mean_g = jnp.mean(xg, axis=(2, 3, 4))
    var_g = jnp.mean(jnp.square(xg - mean_g[:, :, None, None, None]), axis=(2, 3, 4))
    inv_g = lax.rsqrt(var_g + EPS)
    mean_c = jnp.repeat(mean_g, cg, axis=-1)
    inv_c = jnp.repeat(inv_g, cg, axis=-1)
    scale_c = inv_c * gamma[None, :]
    shift_c = beta[None, :] - mean_c * scale_c
    ss = jnp.stack([scale_c, shift_c], axis=1).astype(jnp.float32)    # (B, 2, C)

    # Layout glue: NCHW -> (B, HW, C)
    x_seq = jnp.transpose(x_nchw, (0, 2, 3, 1)).reshape(b, hw, c).astype(jnp.float32)

    # PyTorch Linear: y = x @ W^T + b
    w_qkv = w_in.T.astype(matmul_dtype)                  # (C, 3C)
    b_qkv = b_in.reshape(1, 3 * c).astype(jnp.float32)
    w_o = w_out.T.astype(matmul_dtype)                   # (C, C)
    b_o = b_out.reshape(1, c).astype(jnp.float32)
    sm_scale = 1.0 / math.sqrt(c)

    # ---- pass 1: GroupNorm apply + QKV projection (K stored pre-transposed) ----
    thw = _pick_tile(hw, proj_tile, 128)
    est_p = (2 * thw * c * f32                # x tiles (double buffered)
             + 2 * 3 * c * c * wb             # w_qkv double buffer
             + thw * 3 * c * f32              # qkv f32 temp
             + thw * c * (f32 + wb)           # normalized-xn temps
             + 2 * 3 * thw * c * wb           # q / kT / v output double buffers
             + thw * c * f32)                 # kT transpose temp
    q_all, kT_all, v_all = pl.pallas_call(
        functools.partial(qkv_project_kernel, sm_scale=sm_scale),
        out_shape=(jax.ShapeDtypeStruct((b, hw, c), matmul_dtype),
                   jax.ShapeDtypeStruct((b, c, hw), matmul_dtype),
                   jax.ShapeDtypeStruct((b, hw, c), matmul_dtype)),
        grid_spec=pltpu.PrefetchScalarGridSpec(
            num_scalar_prefetch=0,
            grid=(b, hw // thw),
            in_specs=[
                pl.BlockSpec((1, thw, c), lambda i, t: (i, t, 0)),     # x tile
                pl.BlockSpec((1, 2, c), lambda i, t: (i, 0, 0)),       # GN scale / shift
                pl.BlockSpec((c, 3 * c), lambda i, t: (0, 0)),         # W_qkv
                pl.BlockSpec((1, 3 * c), lambda i, t: (0, 0)),         # b_qkv
            ],
            out_specs=[
                pl.BlockSpec((1, thw, c), lambda i, t: (i, t, 0)),     # Q
                pl.BlockSpec((1, c, thw), lambda i, t: (i, 0, t)),     # K^T
                pl.BlockSpec((1, thw, c), lambda i, t: (i, t, 0)),     # V
            ]),
        compiler_params=pltpu.CompilerParams(
            dimension_semantics=("parallel", "parallel"),
            vmem_limit_bytes=_clamp_vmem(est_p * 3 // 2 + (4 << 20), cap)),
    )(x_seq, ss, w_qkv, b_qkv)

    # ---- pass 2: flash attention + output projection + residual ----
    tq = _pick_tile(hw, q_tile, 8)
    if b == 1 and (hw // tq) < 2:            # ensure >= 2 parallel steps for v7x's 2 TCs
        half = _pick_tile(hw, max(8, hw // 2), 8)
        if hw % half == 0 and hw // half >= 2:
            tq = half
    tk = _pick_tile(hw, k_tile, 128)

    est_f = (2 * tq * c * f32                 # residual x tiles
             + 2 * tq * c * wb                # Q tiles (constant over ki -> no re-DMA)
             + 4 * tk * c * wb                # K^T / V tiles, double buffered
             + 2 * c * c * wb                 # W_o double buffer
             + 2 * tq * c * f32               # output tiles
             + tq * c * f32 + 2 * tq * f32    # acc / m / l scratch
             + 4 * tq * tk * f32)             # score / prob temps
    out_seq = pl.pallas_call(
        attn_flash_kernel,
        out_shape=jax.ShapeDtypeStruct((b, hw, c), jnp.float32),
        grid_spec=pltpu.PrefetchScalarGridSpec(
            num_scalar_prefetch=0,
            grid=(b, hw // tq, hw // tk),
            in_specs=[
                pl.BlockSpec((1, tq, c), lambda i, qi, ki: (i, qi, 0)),   # x (residual)
                pl.BlockSpec((1, tq, c), lambda i, qi, ki: (i, qi, 0)),   # Q tile
                pl.BlockSpec((1, c, tk), lambda i, qi, ki: (i, 0, ki)),   # K^T tile
                pl.BlockSpec((1, tk, c), lambda i, qi, ki: (i, ki, 0)),   # V tile
                pl.BlockSpec((c, c), lambda i, qi, ki: (0, 0)),           # W_o
                pl.BlockSpec((1, c), lambda i, qi, ki: (0, 0)),           # b_o
            ],
            out_specs=pl.BlockSpec((1, tq, c), lambda i, qi, ki: (i, qi, 0)),
            scratch_shapes=[
                pltpu.VMEM((tq, c), jnp.float32),     # output accumulator
                pltpu.VMEM((tq, 1), jnp.float32),     # running max
                pltpu.VMEM((tq, 1), jnp.float32),     # running denominator
            ]),
        compiler_params=pltpu.CompilerParams(
            dimension_semantics=("parallel", "parallel", "arbitrary"),
            vmem_limit_bytes=_clamp_vmem(est_f * 3 // 2 + (4 << 20), cap)),
    )(x_seq, q_all, kT_all, v_all, w_o, b_o)

    # Layout glue: (B, HW, C) -> NCHW
    return jnp.transpose(out_seq.reshape(b, h, w, c), (0, 3, 1, 2))


# ---------------------------------------------------------------------------
# Pure-JAX f32 reference mirroring the PyTorch module.
# ---------------------------------------------------------------------------
def reference_attention_block(x, params):
    gamma, beta, w_in, b_in, w_out, b_out = (
        params["gamma"], params["beta"], params["w_in"], params["b_in"],
        params["w_out"], params["b_out"])
    b, c, h, w = x.shape
    r = x
    xg = x.reshape(b, GROUPS, c // GROUPS, h, w)
    mean = xg.mean(axis=(2, 3, 4), keepdims=True)
    var = xg.var(axis=(2, 3, 4), keepdims=True)
    xn = (xg - mean) / jnp.sqrt(var + EPS)
    xn = xn.reshape(b, c, h, w) * gamma[None, :, None, None] + beta[None, :, None, None]
    seq = jnp.transpose(xn, (0, 2, 3, 1)).reshape(b, h * w, c)
    qkv = seq @ w_in.T + b_in
    q, k, v = qkv[..., :c], qkv[..., c:2 * c], qkv[..., 2 * c:]
    s = jnp.einsum("bqc,bkc->bqk", q, k) / math.sqrt(c)
    p = jax.nn.softmax(s, axis=-1)
    o = jnp.einsum("bqk,bkc->bqc", p, v)
    o = o @ w_out.T + b_out
    o = jnp.transpose(o.reshape(b, h, w, c), (0, 3, 1, 2))
    return o + r


if __name__ == "__main__":
    # C = 128 keeps the lane dimension 128-aligned (lane-dense stores, aligned QKV slices).
    B, C, H, W = 2, 128, 8, 8

    key = jax.random.PRNGKey(0)
    kx, kg, kb, kwi, kbi, kwo, kbo = jax.random.split(key, 7)

    x = jax.random.normal(kx, (B, C, H, W), dtype=jnp.float32)
    params = {
        # nn.GroupNorm(32, C): weight (C,), bias (C,)
        "gamma": 1.0 + 0.1 * jax.random.normal(kg, (C,), dtype=jnp.float32),
        "beta": 0.1 * jax.random.normal(kb, (C,), dtype=jnp.float32),
        # SelfAttention(1, C): in_proj Linear(C, 3C), out_proj Linear(C, C)
        "w_in": jax.random.normal(kwi, (3 * C, C), dtype=jnp.float32) / math.sqrt(C),
        "b_in": 0.1 * jax.random.normal(kbi, (3 * C,), dtype=jnp.float32),
        "w_out": jax.random.normal(kwo, (C, C), dtype=jnp.float32) / math.sqrt(C),
        "b_out": 0.1 * jax.random.normal(kbo, (C,), dtype=jnp.float32),
    }

    # Default (performance) path: bf16 into the MXU, f32 accumulation.
    out_bf16 = jax.block_until_ready(attention_block(x, params))
    # Exact-math path: same kernels with f32 MXU operands (validates kernel logic tightly).
    out_f32 = jax.block_until_ready(attention_block(x, params, matmul_dtype=jnp.float32))

    ref = reference_attention_block(x, params)

    # f32 kernel path vs f32 reference: tight (only approx-reciprocal / reassociation noise).
    np.testing.assert_allclose(np.asarray(out_f32), np.asarray(ref), atol=5e-3, rtol=5e-3)
    # bf16 MXU path vs f32 reference: mixed-precision tolerance.
    np.testing.assert_allclose(np.asarray(out_bf16), np.asarray(ref), atol=1e-1, rtol=1e-2)

    print("KERNEL_OK")
</pallas_src>

<mosaic_0001>
module attributes {stable_mosaic.version = 11 : i64} {
  func.func @qkv_project_kernel(%arg0: i32, %arg1: i32, %arg2: memref<1x64x128xf32, #tpu.memory_space<vmem>>, %arg3: memref<1x2x128xf32, #tpu.memory_space<vmem>>, %arg4: memref<128x384xbf16, #tpu.memory_space<vmem>>, %arg5: memref<1x384xf32, #tpu.memory_space<vmem>>, %arg6: memref<1x64x128xbf16, #tpu.memory_space<vmem>>, %arg7: memref<1x128x64xbf16, #tpu.memory_space<vmem>>, %arg8: memref<1x64x128xbf16, #tpu.memory_space<vmem>>) attributes {dimension_semantics = [#tpu.dimension_semantics<parallel>, #tpu.dimension_semantics<parallel>], iteration_bounds = array<i64: 2, 1>, scalar_prefetch = 0 : i64, scratch_operands = 0 : i64, tpu.core_type = #tpu.core_type<tc>, window_params = [{transform_indices = @transform_0, window_bounds = array<i64: 1, 64, 128>}, {transform_indices = @transform_1, window_bounds = array<i64: 1, 2, 128>}, {pipeline_mode = #tpu.pipeline_mode<synchronous>, transform_indices = @transform_2, window_bounds = array<i64: 128, 384>}, {pipeline_mode = #tpu.pipeline_mode<synchronous>, transform_indices = @transform_3, window_bounds = array<i64: 1, 384>}, {transform_indices = @transform_4, window_bounds = array<i64: 1, 64, 128>}, {transform_indices = @transform_5, window_bounds = array<i64: 1, 128, 64>}, {transform_indices = @transform_6, window_bounds = array<i64: 1, 64, 128>}]} {
    %c0 = arith.constant 0 : index
    %c0_0 = arith.constant 0 : index
    %c0_1 = arith.constant 0 : index
    %0 = vector.load %arg3[%c0, %c0_0, %c0_1] : memref<1x2x128xf32, #tpu.memory_space<vmem>>, vector<1x2x128xf32>
    %1 = vector.shape_cast %0 : vector<1x2x128xf32> to vector<2x128xf32>
    %c0_2 = arith.constant 0 : index
    %c0_3 = arith.constant 0 : index
    %c0_4 = arith.constant 0 : index
    %2 = vector.load %arg2[%c0_2, %c0_3, %c0_4] : memref<1x64x128xf32, #tpu.memory_space<vmem>>, vector<1x64x128xf32>
    %3 = vector.shape_cast %2 : vector<1x64x128xf32> to vector<64x128xf32>
    %4 = vector.extract_strided_slice %1 {offsets = [0, 0], sizes = [1, 128], strides = [1, 1]} : vector<2x128xf32> to vector<1x128xf32>
    %5 = vector.broadcast %4 : vector<1x128xf32> to vector<64x128xf32>
    %6 = arith.mulf %3, %5 : vector<64x128xf32>
    %7 = vector.extract_strided_slice %1 {offsets = [1, 0], sizes = [1, 128], strides = [1, 1]} : vector<2x128xf32> to vector<1x128xf32>
    %8 = vector.broadcast %7 : vector<1x128xf32> to vector<64x128xf32>
    %9 = arith.addf %6, %8 : vector<64x128xf32>
    %10 = arith.truncf %9 : vector<64x128xf32> to vector<64x128xbf16>
    %c0_5 = arith.constant 0 : index
    %c0_6 = arith.constant 0 : index
    %11 = vector.load %arg4[%c0_5, %c0_6] : memref<128x384xbf16, #tpu.memory_space<vmem>>, vector<128x384xbf16>
    %cst = arith.constant dense<0.000000e+00> : vector<64x384xf32>
    %12 = tpu.matmul %10, %11, %cst {dimension_numbers = #tpu.dot_dimension_numbers<[1], [0], [0], [1], [0, 0, 1, 1], [], []>} : vector<64x128xbf16>, vector<128x384xbf16>, vector<64x384xf32> -> vector<64x384xf32>
    %c0_7 = arith.constant 0 : index
    %c0_8 = arith.constant 0 : index
    %13 = vector.load %arg5[%c0_7, %c0_8] : memref<1x384xf32, #tpu.memory_space<vmem>>, vector<1x384xf32>
    %14 = vector.broadcast %13 : vector<1x384xf32> to vector<64x384xf32>
    %15 = arith.addf %12, %14 : vector<64x384xf32>
    %16 = vector.extract_strided_slice %15 {offsets = [0, 0], sizes = [64, 128], strides = [1, 1]} : vector<64x384xf32> to vector<64x128xf32>
    %cst_9 = arith.constant 0.0883883461 : f32
    %17 = vector.broadcast %cst_9 : f32 to vector<64x128xf32>
    %18 = arith.mulf %16, %17 : vector<64x128xf32>
    %19 = vector.extract_strided_slice %15 {offsets = [0, 128], sizes = [64, 128], strides = [1, 1]} : vector<64x384xf32> to vector<64x128xf32>
    %20 = vector.extract_strided_slice %15 {offsets = [0, 256], sizes = [64, 128], strides = [1, 1]} : vector<64x384xf32> to vector<64x128xf32>
    %21 = arith.truncf %18 : vector<64x128xf32> to vector<64x128xbf16>
    %c0_10 = arith.constant 0 : index
    %c0_11 = arith.constant 0 : index
    %c0_12 = arith.constant 0 : index
    %22 = vector.load %arg6[%c0_10, %c0_11, %c0_12] : memref<1x64x128xbf16, #tpu.memory_space<vmem>>, vector<1x64x128xbf16>
    %23 = vector.shape_cast %22 : vector<1x64x128xbf16> to vector<64x128xbf16>
    %24 = vector.shape_cast %21 : vector<64x128xbf16> to vector<1x64x128xbf16>
    tpu.vector_store %arg6[%c0_10, %c0_11, %c0_12], %24 {strides = array<i32>} : memref<1x64x128xbf16, #tpu.memory_space<vmem>>, vector<1x64x128xbf16>,
    %25 = tpu.transpose %19, [1, 0] : vector<64x128xf32> -> vector<128x64xf32>
    %26 = arith.truncf %25 : vector<128x64xf32> to vector<128x64xbf16>
    %c0_13 = arith.constant 0 : index
    %c0_14 = arith.constant 0 : index
    %c0_15 = arith.constant 0 : index
    %27 = vector.load %arg7[%c0_13, %c0_14, %c0_15] : memref<1x128x64xbf16, #tpu.memory_space<vmem>>, vector<1x128x64xbf16>
    %28 = vector.shape_cast %27 : vector<1x128x64xbf16> to vector<128x64xbf16>
    %29 = vector.shape_cast %26 : vector<128x64xbf16> to vector<1x128x64xbf16>
    tpu.vector_store %arg7[%c0_13, %c0_14, %c0_15], %29 {strides = array<i32>} : memref<1x128x64xbf16, #tpu.memory_space<vmem>>, vector<1x128x64xbf16>,
    %30 = arith.truncf %20 : vector<64x128xf32> to vector<64x128xbf16>
    %c0_16 = arith.constant 0 : index
    %c0_17 = arith.constant 0 : index
    %c0_18 = arith.constant 0 : index
    %31 = vector.load %arg8[%c0_16, %c0_17, %c0_18] : memref<1x64x128xbf16, #tpu.memory_space<vmem>>, vector<1x64x128xbf16>
    %32 = vector.shape_cast %31 : vector<1x64x128xbf16> to vector<64x128xbf16>
    %33 = vector.shape_cast %30 : vector<64x128xbf16> to vector<1x64x128xbf16>
    tpu.vector_store %arg8[%c0_16, %c0_17, %c0_18], %33 {strides = array<i32>} : memref<1x64x128xbf16, #tpu.memory_space<vmem>>, vector<1x64x128xbf16>,
    return
  }
  func.func @transform_0(%arg0: i32, %arg1: i32) -> (i32, i32, i32) {
    %c0_i32 = arith.constant 0 : i32
    %c0_i32_0 = arith.constant 0 : i32
    return %arg0, %arg1, %c0_i32 : i32, i32, i32
  }
  func.func @transform_1(%arg0: i32, %arg1: i32) -> (i32, i32, i32) {
    %c0_i32 = arith.constant 0 : i32
    %c0_i32_0 = arith.constant 0 : i32
    %c0_i32_1 = arith.constant 0 : i32
    return %arg0, %c0_i32, %c0_i32_0 : i32, i32, i32
  }
  func.func @transform_2(%arg0: i32, %arg1: i32) -> (i32, i32) {
    %c0_i32 = arith.constant 0 : i32
    %c0_i32_0 = arith.constant 0 : i32
    %c0_i32_1 = arith.constant 0 : i32
    return %c0_i32, %c0_i32_0 : i32, i32
  }
  func.func @transform_3(%arg0: i32, %arg1: i32) -> (i32, i32) {
    %c0_i32 = arith.constant 0 : i32
    %c0_i32_0 = arith.constant 0 : i32
    %c0_i32_1 = arith.constant 0 : i32
    return %c0_i32, %c0_i32_0 : i32, i32
  }
  func.func @transform_4(%arg0: i32, %arg1: i32) -> (i32, i32, i32) {
    %c0_i32 = arith.constant 0 : i32
    %c0_i32_0 = arith.constant 0 : i32
    return %arg0, %arg1, %c0_i32 : i32, i32, i32
  }
  func.func @transform_5(%arg0: i32, %arg1: i32) -> (i32, i32, i32) {
    %c0_i32 = arith.constant 0 : i32
    %c0_i32_0 = arith.constant 0 : i32
    return %arg0, %c0_i32, %arg1 : i32, i32, i32
  }
  func.func @transform_6(%arg0: i32, %arg1: i32) -> (i32, i32, i32) {
    %c0_i32 = arith.constant 0 : i32
    %c0_i32_0 = arith.constant 0 : i32
    return %arg0, %arg1, %c0_i32 : i32, i32, i32
  }
}

</mosaic_0001>

<bundles_post_ra>
// kernel: tpu_custom_call.1
= control target key start
LH: loop header
LB: loop body
LE: loop exit
PB: predicated region body
PF: predicated region fallthrough
CT: control target
= control target key end

     0   :  { %s2086_s0 = inlined_call_operand.hbm [shape: f32[2,64,128], index: 0, kind: input, shape index: {}]   ;;  %s2087_s1 = inlined_call_operand.hbm [shape: f32[2,2,128], index: 1, kind: input, shape index: {}]   ;;  %s2088_s2 = inlined_call_operand.hbm [shape: bf16[128,384], index: 2, kind: input, shape index: {}]   ;;  %s2089_s3 = inlined_call_operand.vmem [shape: f32[1,384], index: 3, kind: input, shape index: {}]   ;;  %s2090_s4 = inlined_call_operand.hbm [shape: bf16[2,64,128], index: 4, kind: output, shape index: {0}]   ;;  %s2091_s5 = inlined_call_operand.vmem [shape: bf16[2,128,64], index: 5, kind: output, shape index: {1}]   ;;  %s2092_s6 = inlined_call_operand.hbm [shape: bf16[2,64,128], index: 6, kind: output, shape index: {2}]  }
   0x1   :  { %2099 = sst [smem:[#allocation22_spill]] %s2086_s0 }
   0x2   :  { %2100 = sst [smem:[#allocation23_spill]] %s2088_s2 }
   0x3   :  { %12 = vsyncpa [#allocation3], 0 }
   0x4   :  { %14 = vsyncpa [#allocation3 + $0x1], 0 }
   0x5   :  { %15 = vsyncpa [#allocation6], 0 }
   0x6   :  { %17 = vsyncpa [#allocation6 + $0x1], 0 }
   0x7   :  { %18 = vsyncpa [#allocation4], 0 }
   0x8   :  { %20 = vsyncpa [#allocation4 + $0x1], 0 }
   0x9   :  { %21 = vsyncpa [#allocation10], 0 }
   0xa   :  { %23 = vsyncpa [#allocation10 + $0x1], 0  ;;  %s1741_s21 = smov 0   ;;  %s1743_s22 = smov 0  }
   0xb   :  { %s1745_s23 = smov 0   ;;  %s1747_s24 = smov 0  }
   0xc   :  { %s1749_s25 = smov 0   ;;  %s1751_s26 = smov 0  }
   0xd LB: > { %2101 = sst [smem:[#allocation16_spill]] %s1672_s21  ;;  %s1772_s27 = sadd.s32 4294967295, %s1692_s26   ;;  %s1692_s26 = sphi %s1751_s26, %s29_s26   ;;  %s1688_s25 = sphi %s1749_s25, %s2127_s25   ;;  %s1684_s24 = sphi %s1747_s24, %s2126_s24   ;;  %s1680_s23 = sphi %s1745_s23, %s2122_s23   ;;  %s1676_s22 = sphi %s1743_s22, %s2125_s22   ;;  %s1672_s21 = sphi %s1741_s21, %s2124_s21  }
   0xe   : > { %2102 = sst [smem:[#allocation17_spill]] %s1680_s23  ;;  %s1170_s28 = sadd.s32 4294967294, %s1692_s26  }
   0xf   : > { %2103 = sst [smem:[#allocation18_spill]] %s1692_s26  ;;  %p63_p0 = scmp.ne.s32.totalorder %s1676_s22, %s1672_s21 }
  0x10   : > { %p64_p1 = scmp.eq.s32.totalorder %s1772_s27, 0  ;;  %p163_p3 = scmp.eq.s32.totalorder %s1170_s28, 1 }
  0x11   : > { %p1171_p5 = scmp.ge.s32.totalorder %s1692_s26, 1  ;;  %p226_p7 = scmp.lt.s32.totalorder %s1692_s26, 3 }
  0x12   : > { %p1781_p4 = por %p64_p1, %p63_p0  ;;  %p1786_p6 = por %p163_p3, %p63_p0 }
  0x13   : > { %p1791_p8 = pnand %p1171_p5, %p226_p7  ;;  %s1694_s8 = smov [#allocation7]  }
  0x14   : > { %s2105_s30 = scalar_select %p1786_p6, 1, 0 }
  0x15   : > { %s238_s9 = sshll.u32 %s1694_s8, 4  ;;  %p1381_p9 = pneg %p1791_p8  ;;  %s239_s9 = int_to_ptr.vmem [resolvable:$true] %s238_s9 }
  0x16   : > { %2106 = sst [smem:[#allocation19_spill]] %s2105_s30  ;;  %p1173_p10 = scmp.ge.s32.totalorder %s1692_s26, 2 }
  0x17   : > { %p1800_p11 = pnand %p1381_p9, %p64_p1  ;;  %s41_s11 = sadd.s32 1, %s1688_s25 }
  0x18   : > { %s1503_s12 = scalar_lea.vmem %s239_s9, 3072  ;;  %p1511_p5 = scmp.lt.s32.totalorder %s239_s9, %s239_s9 }
  0x19   : > { %p1494_p12 = pneg %p1800_p11  ;;  %p1504_p13 = scmp.ne.s32.totalorder %s239_s9, %s1503_s12 }
  0x1a   : > { %p1512_p7 = scmp.lt.s32.totalorder %s1503_s12, %s1503_s12 }
  0x1b   : > { %p1506_p0 = pnand %p1504_p13, %p1494_p12 }
  0x1c   : > { %p1513_p2 = por %p1512_p7, %p1511_p5 }
  0x1d   : > { %p1507_p3 = pneg %p1506_p0 }
  0x1f   : > { %p1514_p6 = pnand %p1513_p2, %p1507_p3 }
  0x21   : > { %1517 = shalt.err (!%p1514_p6)
}
  0x22   : > { %s1695_s13 = smov 192   ;;  %s1696_s14 = smov 12  }
  0x23   : > { %s2109_s2 = sld [smem:[#allocation23_spill]]  ;;  %p43_p2 = scmp.ge.s32.totalorder %s41_s11, 2 }
  0x24   : > { %s50_s17 = sadd.s32 1, %s1680_s23  ;;  %p57_p6 = scmp.ne.s32.totalorder %s1680_s23, %s1676_s22 }
  0x25   : > { %p58_p9 = scmp.eq.s32.totalorder %s1692_s26, 0  ;;  %s2129_s11 = smov (%p43_p2, %s41_s11), 0 }
  0x26   : > { %2110 = sst [smem:[#allocation20_spill]] %s2129_s11  ;;  %p2112_p13 = scmp.eq.s32.totalorder %s1772_s27, 1 }
  0x27   : > { %p1818_p12 = por %p58_p9, %p57_p6  ;;  %s45_s20 = ssub.s32 %s1688_s25, %s2129_s11 }
  0x28   : > { %p1824_p0 = por %p2112_p13, %p57_p6  ;;  %p48_p3 = scmp.eq.s32.totalorder %s45_s20, 0 }
  0x29   : > { %1384 = dma.hbm_to_vmem [thread:$0]  (!%p1800_p11), %s2109_s2, 3072, %s239_s9, [#allocation6], %s1695_s13, %s1695_s13, %s1696_s14  }
  0x2a   : > { %p1400_p11 = scmp.lt.s32.totalorder %s1692_s26, 2  ;;  %s1832_s28 = sand.u32 1, %s1680_s23  }
  0x2b   : > { %s1174_s8 = sshll.u32 %s1832_s28, 6  ;;  %s1251_s10 = sshll.u32 %s1688_s25, 10 }
  0x2c   : > { %s1836_s9 = scalar_select %p48_p3, %s1680_s23, %s50_s17  }
  0x2d   : > { %s2115_s0 = sld [smem:[#allocation22_spill]]  ;;  %s259_s15 = scalar_lea.vmem [#allocation2], %s1174_s8 }
  0x2e   : > { %2114 = sst [smem:[#allocation21_spill]] %s1836_s9  ;;  %s268_s16 = sshll.u32 %s259_s15, 4  ;;  %s269_s16 = int_to_ptr.vmem [resolvable:$true] %s268_s16 }
  0x2f   : > { %p1844_p5 = pnand %p1400_p11, %p1818_p12  ;;  %s278_s20 = sand.u32 1, %s1692_s26  }
  0x30   : > { %s256_s11 = scalar_lea.sflag [#allocation3], %s1832_s28  ;;  %s1531_s17 = scalar_lea.vmem %s269_s16, 1024 }
  0x31   : > { %p1520_p7 = pneg %p1844_p5  ;;  %p1532_p2 = scmp.ne.s32.totalorder %s269_s16, %s1531_s17 }
  0x32   : > { %s1697_s8 = smov [#allocation2]  }
  0x33   : > { %s267_s14 = scalar_lea.hbm %s2115_s0, %s1251_s10  ;;  %p1534_p6 = pnand %p1532_p2, %p1520_p7 }
  0x34   : > { %s1536_s10 = sshll.u32 %s1697_s8, 4  ;;  %s1537_s10 = int_to_ptr.vmem [resolvable:$false] %s1536_s10 }
  0x35   : > { %p1535_p9 = pneg %p1534_p6  ;;  %s1538_s18 = scalar_lea.vmem %s1537_s10, 2048 }
  0x36   : > { %p1539_p12 = scmp.lt.s32.totalorder %s269_s16, %s1537_s10  ;;  %p1540_p13 = scmp.lt.s32.totalorder %s1538_s18, %s1531_s17 }
  0x38   : > { %p1541_p11 = por %p1540_p13, %p1539_p12 }
  0x3a   : > { %p1542_p3 = pnand %p1541_p11, %p1535_p9 }
  0x3c   : > { %1545 = shalt.err (!%p1542_p3)
}
  0x3d   : > { %s1698_s12 = smov 128   ;;  %s1699_s13 = smov 8  }
  0x3e   : > { %1388 = dma.hbm_to_vmem [thread:$0]  (!%p1844_p5), %s267_s14, 1024, %s269_s16, %s256_s11, %s1698_s12, %s1698_s12, %s1699_s13  }
  0x3f   : > { %s1177_s15 = sshll.u32 %s1832_s28, 1  ;;  %s1178_s0 = sshll.u32 %s1688_s25, 5 }
  0x40   : > { %s287_s8 = scalar_lea.hbm %s2087_s1, %s1178_s0  ;;  %s282_s26 = scalar_lea.vmem [#allocation5], %s1177_s15 }
  0x41   : > { %s289_s10 = sshll.u32 %s282_s26, 4  ;;  %s279_s17 = scalar_lea.sflag [#allocation6], %s278_s20  ;;  %s290_s10 = int_to_ptr.vmem [resolvable:$true] %s289_s10 }
  0x42   : > { %s1559_s18 = scalar_lea.vmem %s290_s10, 32  ;;  %s1700_s30 = smov [#allocation5]  }
  0x43   : > { %p1560_p2 = scmp.ne.s32.totalorder %s290_s10, %s1559_s18  ;;  %s1564_s21 = sshll.u32 %s1700_s30, 4  ;;  %s1565_s21 = int_to_ptr.vmem [resolvable:$false] %s1564_s21 }
  0x44   : > { %s1566_s11 = scalar_lea.vmem %s1565_s21, 64  ;;  %p1567_p12 = scmp.lt.s32.totalorder %s290_s10, %s1565_s21 }
  0x45   : > { %p1562_p6 = pnand %p1560_p2, %p1520_p7  ;;  %p1568_p13 = scmp.lt.s32.totalorder %s1566_s11, %s1559_s18 }
  0x47   : > { %p1563_p9 = pneg %p1562_p6  ;;  %p1569_p11 = por %p1568_p13, %p1567_p12 }
  0x49   : > { %p1570_p3 = pnand %p1569_p11, %p1563_p9 }
  0x4b   : > { %1573 = shalt.err (!%p1570_p3)
}
  0x4c   : > { %1391 = dma.hbm_to_vmem [thread:$0]  (!%p1844_p5), %s287_s8, 32, %s290_s10, %s279_s17  }
  0x4d   : > { %298 = sbr.rel (%p1791_p8) target bundleno = 506 (0x1fa), region = 36  ;;  %s1870_s0 = sand.u32 (!%p1791_p8), 1, %s1676_s22  }
  0x4e   : > { %s1180_s23 = sshll.u32 (!%p1791_p8), %s1870_s0, 6  ;;  %s301_s26 = scalar_lea.sflag (!%p1791_p8), [#allocation3], %s1870_s0 }
  0x4f   : > { %s1874_s30 = scalar_lea.vmem (!%p1791_p8), [#allocation2], %s1180_s23 }
  0x52   : > { %1651 = dma.done.wait (%p1781_p4), %s301_s26, 1024  }
  0x53   : > { %1653 = vsyncadd (%p1781_p4), %s301_s26, 4294966272  ;;  %s309_s2 = sand.u32 1, %s1772_s27   ;;  %s1181_s21 = sshll.u32 %s1870_s0, 1 }
  0x54   : > { %s310_s7 = scalar_lea.sflag [#allocation6], %s309_s2  ;;  %s313_s28 = scalar_lea.vmem [#allocation5], %s1181_s21 }
  0x55   : > { %1655 = dma.done.wait (%p1781_p4), %s310_s7, 32  }
  0x56   : > { %1657 = vsyncadd (%p1781_p4), %s310_s7, 4294967264 }
  0x57   : > { %1659 = dma.done.wait (%p64_p1), [#allocation6], 3072  }
  0x58   : > { %1661 = vsyncadd (%p64_p1), [#allocation6], 4294964224  ;;  %v1701_v0 = vmov 0   ;;  %v385_v1 = vlaneseq  ;;  %v1460_v2 = vld [vmem:[#allocation7 + $0xac] ss:$12 sps:$4 sm:$0xff]   ;;  %v377_v14 = vld [vmem:[%s1874_s30] sm:$0xff] }
  0x59   : > { %622 = vmatprep.mubr.bf16.mxu0 %v1701_v0  ;;  %v1462_v3 = vld [vmem:[#allocation7 + $0xa8] ss:$12 sps:$4 sm:$0xff]   ;;  %590 = vmatprep.subr.bf16.mxu0 %v1460_v2  ;;  %v1465_v5 = vld [vmem:[#allocation7 + $0x90] ss:$12 sps:$4 sm:$0xff]   ;;  %v1468_v8 = vld [vmem:[#allocation7 + $0x78] ss:$12 sps:$4 sm:$0xff]  }
  0x5a   : > { %v1463_v4 = vld [vmem:[#allocation7 + $0x94] ss:$12 sps:$4 sm:$0xff]   ;;  %591 = vmatpush1.bf16.msra.mxu0 %v1462_v3  ;;  %v1891_v6 = vshrl.u32 %v385_v1, 7  ;;  %v1466_v7 = vld [vmem:[#allocation7 + $0x7c] ss:$12 sps:$4 sm:$0xff]   ;;  %v379_v35 = vld [vmem:[%s1874_s30 + $0x10] sm:$0xff] }
  0x5b   : > { %592 = vmatprep.subr.bf16.mxu0 %v1463_v4  ;;  %v1469_v11 = vld [vmem:[#allocation7 + $0x64] ss:$12 sps:$4 sm:$0xff]   ;;  %v376_v12 = vld [vmem:[%s313_s28] sm:$0x3]  ;;  %v1471_v13 = vld [vmem:[#allocation7 + $0x60] ss:$12 sps:$4 sm:$0xff]  }
  0x5c   : > { %v387_v9 = vsub.s32 0, %v1891_v6  ;;  %v399_v10 = vsub.s32 1, %v1891_v6  ;;  %v378_v15 = vld [vmem:[%s1874_s30 + $0x8] sm:$0xff]  ;;  %v1472_v18 = vld [vmem:[#allocation7 + $0x4c] ss:$12 sps:$4 sm:$0xff]   ;;  %v381_v43 = vld [vmem:[%s1874_s30 + $0x20] sm:$0xff] }
  0x5d   : > { %v1474_v19 = vld [vmem:[#allocation7 + $0x48] ss:$12 sps:$4 sm:$0xff]   ;;  %v1484_v22 = vld [vmem:[#allocation7 + $0xb0] ss:$12 sps:$4 sm:$0xff]   ;;  %v1485_v25 = vld [vmem:[#allocation7 + $0x98] ss:$12 sps:$4 sm:$0xff]  }
  0x5e   : > { %593 = vmatpush1.bf16.msra.mxu0 %v1465_v5  ;;  %v1899_v16 = vrot.slane %v376_v12, %v387_v9  ;;  %v1903_v17 = vrot.slane %v376_v12, %v399_v10  ;;  %v1475_v26 = vld [vmem:[#allocation7 + $0x34] ss:$12 sps:$4 sm:$0xff]   ;;  %1345 = vmatprep.subr.bf16.mxu1 %v1484_v22  ;;  %v1477_v27 = vld [vmem:[#allocation7 + $0x30] ss:$12 sps:$4 sm:$0xff]   ;;  %v1480_v31 = vld [vmem:[#allocation7 + $0x18] ss:$12 sps:$4 sm:$0xff]  }
  0x5f   : > { %594 = vmatprep.subr.bf16.mxu0 %v1466_v7  ;;  %1346 = vmatpush3.bf16.msra.mxu1 %v1484_v22  ;;  %v1486_v29 = vld [vmem:[#allocation7 + $0x80] ss:$12 sps:$4 sm:$0xff]   ;;  %v1478_v30 = vld [vmem:[#allocation7 + $0x1c] ss:$12 sps:$4 sm:$0xff]   ;;  %v1481_v33 = vld [vmem:[#allocation7 + $0x4] ss:$12 sps:$4 sm:$0xff]  }
  0x60   : > { %v389_v20 = vmul.f32 %v1899_v16, %v377_v14  ;;  %v390_v21 = vmul.f32 %v1899_v16, %v378_v15  ;;  %1347 = vmatprep.subr.bf16.mxu1 %v1485_v25  ;;  %v1487_v32 = vld [vmem:[#allocation7 + $0x68] ss:$12 sps:$4 sm:$0xff]   ;;  %v1483_v34 = vld [vmem:[#allocation7] ss:$12 sps:$4 sm:$0xff]   ;;  %v1488_v37 = vld [vmem:[#allocation7 + $0x50] ss:$12 sps:$4 sm:$0xff]   ;;  %v391_v38 = vmul.f32 %v1899_v16, %v379_v35  ;;  %v393_v47 = vmul.f32 %v1899_v16, %v381_v43 }
  0x61   : > { %v380_v36 = vld [vmem:[%s1874_s30 + $0x18] sm:$0xff]  ;;  %v382_v44 = vld [vmem:[%s1874_s30 + $0x28] sm:$0xff]  ;;  %v1490_v45 = vld [vmem:[#allocation7 + $0x20] ss:$12 sps:$4 sm:$0xff]   ;;  %s1183_s9 = sshll.u32 %s1870_s0, 5  ;;  %s1285_s13 = sshll.u32 %s1684_s24, 9 }
  0x62   : > { %595 = vmatpush1.bf16.msra.mxu0 %v1468_v8  ;;  %v401_v23 = vadd.f32 %v1903_v17, %v389_v20  ;;  %v402_v24 = vadd.f32 %v1903_v17, %v390_v21  ;;  %v392_v39 = vmul.f32 %v1899_v16, %v380_v36  ;;  %v1489_v40 = vld [vmem:[#allocation7 + $0x38] ss:$12 sps:$4 sm:$0xff]   ;;  %v403_v41 = vadd.f32 %v1903_v17, %v391_v38  ;;  %v1491_v49 = vld [vmem:[#allocation7 + $0x8] ss:$12 sps:$4 sm:$0xff]   ;;  %v383_v52 = vld [vmem:[%s1874_s30 + $0x30] sm:$0xff]  ;;  %s1944_s14 = scalar_lea.vmem [#allocation8], %s1183_s9  ;;  %s1965_s10 = scalar_lea.hbm %s2090_s4, %s1285_s13 }
  0x63   : > { %596 = vmatprep.subr.bf16.mxu0 %v1469_v11  ;;  %1348 = vmatpush3.bf16.msra.mxu1 %v1485_v25  ;;  %v394_v48 = vmul.f32 %v1899_v16, %v382_v44  ;;  %v405_v50 = vadd.f32 %v1903_v17, %v393_v47  ;;  %v384_v53 = vld [vmem:[%s1874_s30 + $0x38] sm:$0xff]  ;;  %v395_v55 = vmul.f32 %v1899_v16, %v383_v52  ;;  %v1933_v60 = vld [vmem:[%s2089_s3] sm:$0x7]  ;;  %s363_s16 = scalar_lea.vmem [#allocation9], %s1183_s9  ;;  %s958_s20 = sshll.u32 %s1944_s14, 4  ;;  %s1955_s20 = int_to_ptr.vmem [resolvable:$true] %s958_s20 }
  0x64   : > { %v409_v28 = vpack.c.bf16 %v402_v24, %v401_v23  ;;  %1349 = vmatprep.subr.bf16.mxu1 %v1486_v29  ;;  %v404_v42 = vadd.f32 %v1903_v17, %v392_v39  ;;  %v396_v56 = vmul.f32 %v1899_v16, %v384_v53  ;;  %v450_v61 = vrot.slane %v1933_v60, %v387_v9  ;;  %s979_s12 = sshll.u32 %s363_s16, 4  ;;  %s930_s17 = scalar_lea.sflag [#allocation4], %s1870_s0  ;;  %s1957_s12 = int_to_ptr.vmem [resolvable:$true] %s979_s12 }
  0x65   : > { %v406_v51 = vadd.f32 %v1903_v17, %v394_v48  ;;  %v407_v57 = vadd.f32 %v1903_v17, %v395_v55  ;;  %v454_v62 = vrot.slane %v1933_v60, %v399_v10  ;;  %s1574_s18 = scalar_lea.vmem %s1955_s20, 512  ;;  %s1702_s11 = smov [#allocation8]  }
  0x66   : > { %597 = vmatpush1.bf16.msra.mxu0 %v1471_v13  ;;  %1361 = vmatprep.mubr.bf16.mxu1 %v409_v28  ;;  %v410_v46 = vpack.c.bf16 %v404_v42, %v403_v41  ;;  %v408_v58 = vadd.f32 %v1903_v17, %v396_v56  ;;  %p1575_p1 = scmp.ne.s32.totalorder %s1955_s20, %s1574_s18  ;;  %s1578_s23 = sshll.u32 %s1702_s11, 4  ;;  %s1579_s23 = int_to_ptr.vmem [resolvable:$false] %s1578_s23 }
  0x67   : > { %598 = vmatprep.subr.bf16.mxu0 %v1472_v18  ;;  %1350 = vmatpush3.bf16.msra.mxu1 %v1486_v29  ;;  %v411_v54 = vpack.c.bf16 %v406_v51, %v405_v50  ;;  %s1580_s26 = scalar_lea.vmem %s1579_s23, 1024  ;;  %p1581_p5 = scmp.lt.s32.totalorder %s1955_s20, %s1579_s23 }
  0x68   : > { %1351 = vmatprep.subr.bf16.mxu1 %v1487_v32  ;;  %v412_v59 = vpack.c.bf16 %v408_v58, %v407_v57  ;;  %p1576_p4 = pnand %p1575_p1, %p1824_p0  ;;  %p1582_p7 = scmp.lt.s32.totalorder %s1580_s26, %s1574_s18 }
  0x6a   : > { %599 = vmatpush1.bf16.msra.mxu0 %v1474_v19  ;;  %p1577_p8 = pneg %p1576_p4  ;;  %p1583_p2 = por %p1582_p7, %p1581_p5 }
  0x6b   : > { %600 = vmatprep.subr.bf16.mxu0 %v1475_v26  ;;  %1352 = vmatpush3.bf16.msra.mxu1 %v1487_v32 }
  0x6c   : > { %1353 = vmatprep.subr.bf16.mxu1 %v1488_v37  ;;  %p1584_p6 = pnand %p1583_p2, %p1577_p8 }
  0x6e   : > { %601 = vmatpush1.bf16.msra.mxu0 %v1477_v27 }
  0x6f   : > { %602 = vmatprep.subr.bf16.mxu0 %v1478_v30  ;;  %1354 = vmatpush3.bf16.msra.mxu1 %v1488_v37 }
  0x70   : > { %1355 = vmatprep.subr.bf16.mxu1 %v1489_v40 }
  0x72   : > { %603 = vmatpush1.bf16.msra.mxu0 %v1480_v31 }
  0x73   : > { %604 = vmatprep.subr.bf16.mxu0 %v1481_v33  ;;  %1356 = vmatpush3.bf16.msra.mxu1 %v1489_v40 }
  0x74   : > { %1357 = vmatprep.subr.bf16.mxu1 %v1490_v45 }
  0x76   : > { %605 = vmatpush1.bf16.msra.mxu0 %v1483_v34 }
  0x77   : > { %1358 = vmatpush3.bf16.msra.mxu1 %v1490_v45  ;;  %v457_v45 = vsub.s32 2, %v1891_v6 }
  0x78   : > { %1359 = vmatprep.subr.bf16.mxu1 %v1491_v49 }
  0x79   : > { %623 = vmatmul.mubr.bf16.vlgmr.msra.gmra.mxu0 %v409_v28  ;;  %v458_v47 = vrot.slane %v1933_v60, %v457_v45 }
  0x7a   : > { %632 = vmatprep.mubr.bf16.mxu0 %v1701_v0 }
  0x7b   : > { %1360 = vmatpush3.bf16.msra.mxu1 %v1491_v49 }
  0x7e   : > { %1362 = vmatmul.mubr.bf16.vlgmr.msra.gmra.mxu1 %v410_v46 }
  0x7f   : > { %1365 = vmatprep.mubr.bf16.mxu1 %v411_v54 }
  0x81   : > { %633 = vmatmul.mubr.bf16.gmra.mxu0 %v410_v46 }
  0x82   : > { %642 = vmatprep.mubr.bf16.mxu0 %v1701_v0 }
  0x86   : > { %1366 = vmatmul.mubr.bf16.gmra.mxu1 %v412_v59 }
  0x89   : > { %643 = vmatmul.mubr.bf16.gmra.mxu0 %v411_v54 }
  0x8a   : > { %652 = vmatprep.mubr.bf16.mxu0 %v1701_v0 }
  0x91   : > { %653 = vmatmul.mubr.bf16.gmra.mxu0 %v412_v59 }
 0x139   : > { %v624_v63 = vpop.f32.mrf.mxu0 }
 0x13a   : > { %v625_v0 = vadd.f32 %v624_v63, %v450_v61 }
 0x13b   : > { %v626_v1 = vpop.f32.mrf.mxu0 }
 0x13c   : > { %v627_v2 = vadd.f32 %v626_v1, %v454_v62  ;;  %v728_v7 = vmul.f32 0.088388346, %v625_v0 }
 0x13d   : > { %v628_v3 = vpop.f32.mrf.mxu0 }
 0x13e   : > { %v629_v4 = vadd.f32 %v628_v3, %v450_v61  ;;  %776 = vxpose.xlu0.b32.start [1/8] (short) %v627_v2, 128  ;;  %v1363_v44 = vpop.f32.mrf.mxu1 }
 0x13f   : > { %v630_v5 = vpop.f32.mrf.mxu0  ;;  %v706_v49 = vadd.f32 %v1363_v44, %v458_v47 }
 0x140   : > { %v729_v8 = vmul.f32 0.088388346, %v629_v4  ;;  %v631_v11 = vadd.f32 %v630_v5, %v454_v62  ;;  %v697_v46 = vpop.f32.mrf.mxu1 }
 0x141   : > { %v634_v12 = vpop.f32.mrf.mxu0  ;;  %v698_v50 = vadd.f32 %v697_v46, %v458_v47 }
 0x142   : > { %v1290_v13 = vpack.c.bf16 %v729_v8, %v728_v7  ;;  %777 = vxpose.xlu0.b32.cont [2/8] (short) %v631_v11, 128  ;;  %v635_v10 = vadd.f32 %v634_v12, %v450_v61  ;;  %v1364_v48 = vpop.f32.mrf.mxu1 }
 0x143   : > { %v636_v9 = vpop.f32.mrf.mxu0  ;;  %v709_v51 = vadd.f32 %v1364_v48, %v458_v47 }
 0x144   : > { %1291 = vst [vmem:[%s1944_s14] sm:$0xff] %v1290_v13   ;;  %v637_v14 = vadd.f32 %v636_v9, %v454_v62  ;;  %v730_v18 = vmul.f32 0.088388346, %v635_v10  ;;  %v700_v52 = vpop.f32.mrf.mxu1 }
 0x145   : > { %v638_v15 = vpop.f32.mrf.mxu0  ;;  %v701_v53 = vadd.f32 %v700_v52, %v458_v47  ;;  %v1315_v54 = vpack.c.bf16 %v709_v51, %v706_v49 }
 0x146   : > { %v639_v16 = vadd.f32 %v638_v15, %v450_v61  ;;  %778 = vxpose.xlu0.b32.cont [3/8] (short) %v637_v14, 128  ;;  %v1367_v55 = vpop.f32.mrf.mxu1 }
 0x147   : > { %v640_v17 = vpop.f32.mrf.mxu0  ;;  %v1310_v56 = vpack.c.bf16 %v701_v53, %v698_v50  ;;  %1330 = vst [vmem:[%s363_s16 + $0x8] sm:$0xff] %v1315_v54   ;;  %v722_v6 = vadd.f32 %v1367_v55, %v458_v47 }
 0x148   : > { %v731_v19 = vmul.f32 0.088388346, %v639_v16  ;;  %v641_v20 = vadd.f32 %v640_v17, %v454_v62  ;;  %v713_v57 = vpop.f32.mrf.mxu1 }
 0x149   : > { %v644_v21 = vpop.f32.mrf.mxu0  ;;  %1311 = vst [vmem:[%s363_s16] sm:$0xff] %v1310_v56   ;;  %v714_v59 = vadd.f32 %v713_v57, %v458_v47 }
 0x14a   : > { %v1295_v22 = vpack.c.bf16 %v731_v19, %v730_v18  ;;  %779 = vxpose.xlu0.b32.cont [4/8] (short) %v641_v20, 128  ;;  %v645_v24 = vadd.f32 %v644_v21, %v450_v61  ;;  %v1368_v58 = vpop.f32.mrf.mxu1 }
 0x14b   : > { %v646_v23 = vpop.f32.mrf.mxu0  ;;  %v725_v60 = vadd.f32 %v1368_v58, %v458_v47 }
 0x14c   : > { %1327 = vst [vmem:[%s1944_s14 + $0x8] sm:$0xff] %v1295_v22   ;;  %v647_v25 = vadd.f32 %v646_v23, %v454_v62  ;;  %v732_v29 = vmul.f32 0.088388346, %v645_v24 }
 0x14d   : > { %v648_v26 = vpop.f32.mrf.mxu0  ;;  %v1325_v63 = vpack.c.bf16 %v725_v60, %v722_v6 }
 0x14e   : > { %v649_v27 = vadd.f32 %v648_v26, %v450_v61  ;;  %780 = vxpose.xlu0.b32.cont [5/8] (short) %v647_v25, 128 }
 0x14f   : > { %v650_v28 = vpop.f32.mrf.mxu0  ;;  %1332 = vst [vmem:[%s363_s16 + $0x18] sm:$0xff] %v1325_v63  }
 0x150   : > { %v733_v30 = vmul.f32 0.088388346, %v649_v27  ;;  %v651_v31 = vadd.f32 %v650_v28, %v454_v62 }
 0x151   : > { %v654_v32 = vpop.f32.mrf.mxu0 }
 0x152   : > { %v1300_v33 = vpack.c.bf16 %v733_v30, %v732_v29  ;;  %781 = vxpose.xlu0.b32.cont [6/8] (short) %v651_v31, 128  ;;  %v655_v35 = vadd.f32 %v654_v32, %v450_v61 }
 0x153   : > { %v656_v34 = vpop.f32.mrf.mxu0 }
 0x154   : > { %1328 = vst [vmem:[%s1944_s14 + $0x10] sm:$0xff] %v1300_v33   ;;  %v657_v36 = vadd.f32 %v656_v34, %v454_v62  ;;  %v734_v40 = vmul.f32 0.088388346, %v655_v35 }
 0x155   : > { %v658_v37 = vpop.f32.mrf.mxu0 }
 0x156   : > { %v659_v38 = vadd.f32 %v658_v37, %v450_v61  ;;  %782 = vxpose.xlu0.b32.cont [7/8] (short) %v657_v36, 128  ;;  %v716_v61 = vpop.f32.mrf.mxu1 }
 0x157   : > { %v660_v39 = vpop.f32.mrf.mxu0 }
 0x158   : > { %v735_v41 = vmul.f32 0.088388346, %v659_v38  ;;  %v661_v42 = vadd.f32 %v660_v39, %v454_v62  ;;  %v717_v62 = vadd.f32 %v716_v61, %v458_v47 }
 0x15a   : > { %v1305_v43 = vpack.c.bf16 %v735_v41, %v734_v40  ;;  %783 = vxpose.xlu0.b32.end [8/8] (short) %v661_v42, 128  ;;  %v1320_v1 = vpack.c.bf16 %v717_v62, %v714_v59 }
 0x15c   : > { %1329 = vst [vmem:[%s1944_s14 + $0x18] sm:$0xff] %v1305_v43   ;;  %1331 = vst [vmem:[%s363_s16 + $0x10] sm:$0xff] %v1320_v1  }
 0x15d   : > { %1587 = shalt.err (!%p1584_p6)
}
 0x15e   : > { %s1588_s30 = scalar_lea.hbm %s1965_s10, 512  ;;  %s1592_s7 = scalar_lea.hbm %s2090_s4, 1024 }
 0x15f   : > { %p1589_p9 = scmp.ne.s32.totalorder %s1965_s10, %s1588_s30  ;;  %p1593_p11 = scmp.lt.s32.totalorder %s1965_s10, %s2090_s4 }
 0x160   : > { %p1594_p3 = scmp.lt.s32.totalorder %s1592_s7, %s1588_s30 }
 0x161   : > { %p1590_p12 = pnand %p1589_p9, %p1824_p0 }
 0x162   : > { %p1595_p1 = por %p1594_p3, %p1593_p11 }
 0x163   : > { %p1591_p13 = pneg %p1590_p12 }
 0x165   : > { %p1596_p4 = pnand %p1595_p1, %p1591_p13 }
 0x167   : > { %1599 = shalt.err (!%p1596_p4)
}
 0x168   : > { %s1703_s29 = smov 64   ;;  %s1704_s9 = smov 4  }
 0x169   : > { %1377 = dma.vmem_to_hbm [thread:$0]  (%p1824_p0), %s1955_s20, 512, %s1965_s10, %s930_s17, %s1703_s29, %s1703_s29, %s1704_s9  }
 0x16a   : > { %s1998_s15 = scalar_lea.hbm %s2092_s6, %s1285_s13  ;;  %s943_s8 = scalar_lea.sflag [#allocation10], %s1870_s0 }
 0x16b   : > { %s1600_s18 = scalar_lea.vmem %s1957_s12, 512  ;;  %s1705_s11 = smov [#allocation9]  }
 0x16c   : > { %p1601_p8 = scmp.ne.s32.totalorder %s1957_s12, %s1600_s18  ;;  %s1604_s23 = sshll.u32 %s1705_s11, 4  ;;  %s1605_s23 = int_to_ptr.vmem [resolvable:$false] %s1604_s23 }
 0x16d   : > { %s1606_s26 = scalar_lea.vmem %s1605_s23, 1024  ;;  %p1607_p2 = scmp.lt.s32.totalorder %s1957_s12, %s1605_s23 }
 0x16e   : > { %p1602_p5 = pnand %p1601_p8, %p1824_p0  ;;  %p1608_p6 = scmp.lt.s32.totalorder %s1606_s26, %s1600_s18 }
 0x170   : > { %p1603_p7 = pneg %p1602_p5  ;;  %p1609_p9 = por %p1608_p6, %p1607_p2 }
 0x172   : > { %p1610_p12 = pnand %p1609_p9, %p1603_p7 }
 0x174   : > { %1613 = shalt.err (!%p1610_p12)
}
 0x175   : > { %s1614_s20 = scalar_lea.hbm %s1998_s15, 512  ;;  %s1618_s10 = scalar_lea.hbm %s2092_s6, 1024 }
 0x176   : > { %p1615_p13 = scmp.ne.s32.totalorder %s1998_s15, %s1614_s20  ;;  %p1619_p1 = scmp.lt.s32.totalorder %s1998_s15, %s2092_s6 }
 0x177   : > { %p1620_p4 = scmp.lt.s32.totalorder %s1618_s10, %s1614_s20 }
 0x178   : > { %p1616_p11 = pnand %p1615_p13, %p1824_p0 }
 0x179   : > { %p1621_p8 = por %p1620_p4, %p1619_p1 }
 0x17a   : > { %p1617_p3 = pneg %p1616_p11 }
 0x17c   : > { %p1622_p5 = pnand %p1621_p8, %p1617_p3 }
 0x17e   : > { %1625 = shalt.err (!%p1622_p5)
}
 0x17f   : > { %1378 = dma.vmem_to_hbm [thread:$0]  (%p1824_p0), %s1957_s12, 512, %s1998_s15, %s943_s8, %s1703_s29, %s1703_s29, %s1704_s9   ;;  %vm872_vm0 = vcmask 519168  }
 0x180   : > { %p366_p7 = scmp.lt.s32.totalorder %s1684_s24, 1 }
 0x182   : > { %s2131_s24 = smov (!%p366_p7, %s1684_s24), 1 }
 0x183   : > { %s1252_s2 = sshll.u32 %s2131_s24, 6 }
 0x184   : > { %s2029_s28 = scalar_lea.vmem %s2091_s5, %s1252_s2 }
 0x1ba   : > { %v792_v0 = vpop.trf.xlu0 }
 0x1bb   : > { %v1261_v2 = vpack.c.bf16 %v792_v0, %v792_v0 }
 0x1bd   : > { %873 = vst.msk [vmem:[%s2029_s28] sm:$0xf] %vm872_vm0, %v1261_v2 }
 0x1be   : > { %v793_v3 = vpop.trf.xlu0 }
 0x1bf   : > { %v1262_v4 = vpack.c.bf16 %v793_v3, %v793_v3 }
 0x1c1   : > { %874 = vst.msk [vmem:[%s2029_s28 + $0x4] sm:$0xf] %vm872_vm0, %v1262_v4 }
 0x1c2   : > { %v794_v5 = vpop.trf.xlu0 }
 0x1c3   : > { %v1263_v7 = vpack.c.bf16 %v794_v5, %v794_v5 }
 0x1c5   : > { %875 = vst.msk [vmem:[%s2029_s28 + $0x8] sm:$0xf] %vm872_vm0, %v1263_v7 }
 0x1c6   : > { %v795_v8 = vpop.trf.xlu0 }
 0x1c7   : > { %v1264_v11 = vpack.c.bf16 %v795_v8, %v795_v8 }
 0x1c9   : > { %876 = vst.msk [vmem:[%s2029_s28 + $0xc] sm:$0xf] %vm872_vm0, %v1264_v11 }
 0x1ca   : > { %v796_v12 = vpop.trf.xlu0 }
 0x1cb   : > { %v1265_v13 = vpack.c.bf16 %v796_v12, %v796_v12 }
 0x1cd   : > { %877 = vst.msk [vmem:[%s2029_s28 + $0x10] sm:$0xf] %vm872_vm0, %v1265_v13 }
 0x1ce   : > { %v797_v9 = vpop.trf.xlu0 }
 0x1cf   : > { %v1266_v10 = vpack.c.bf16 %v797_v9, %v797_v9 }
 0x1d1   : > { %878 = vst.msk [vmem:[%s2029_s28 + $0x14] sm:$0xf] %vm872_vm0, %v1266_v10 }
 0x1d2   : > { %v798_v14 = vpop.trf.xlu0 }
 0x1d3   : > { %v1267_v15 = vpack.c.bf16 %v798_v14, %v798_v14 }
 0x1d5   : > { %879 = vst.msk [vmem:[%s2029_s28 + $0x18] sm:$0xf] %vm872_vm0, %v1267_v15 }
 0x1d6   : > { %v799_v16 = vpop.trf.xlu0 }
 0x1d7   : > { %v1268_v17 = vpack.c.bf16 %v799_v16, %v799_v16 }
 0x1d9   : > { %880 = vst.msk [vmem:[%s2029_s28 + $0x1c] sm:$0xf] %vm872_vm0, %v1268_v17 }
 0x1da   : > { %v800_v18 = vpop.trf.xlu0 }
 0x1db   : > { %v1269_v19 = vpack.c.bf16 %v800_v18, %v800_v18 }
 0x1dd   : > { %881 = vst.msk [vmem:[%s2029_s28 + $0x20] sm:$0xf] %vm872_vm0, %v1269_v19 }
 0x1de   : > { %v801_v20 = vpop.trf.xlu0 }
 0x1df   : > { %v1270_v21 = vpack.c.bf16 %v801_v20, %v801_v20 }
 0x1e1   : > { %882 = vst.msk [vmem:[%s2029_s28 + $0x24] sm:$0xf] %vm872_vm0, %v1270_v21 }
 0x1e2   : > { %v802_v22 = vpop.trf.xlu0 }
 0x1e3   : > { %v1271_v23 = vpack.c.bf16 %v802_v22, %v802_v22 }
 0x1e5   : > { %883 = vst.msk [vmem:[%s2029_s28 + $0x28] sm:$0xf] %vm872_vm0, %v1271_v23 }
 0x1e6   : > { %v803_v24 = vpop.trf.xlu0 }
 0x1e7   : > { %v1272_v25 = vpack.c.bf16 %v803_v24, %v803_v24 }
 0x1e9   : > { %884 = vst.msk [vmem:[%s2029_s28 + $0x2c] sm:$0xf] %vm872_vm0, %v1272_v25 }
 0x1ea   : > { %v804_v26 = vpop.trf.xlu0 }
 0x1eb   : > { %v1273_v27 = vpack.c.bf16 %v804_v26, %v804_v26 }
 0x1ed   : > { %885 = vst.msk [vmem:[%s2029_s28 + $0x30] sm:$0xf] %vm872_vm0, %v1273_v27 }
 0x1ee   : > { %v805_v28 = vpop.trf.xlu0 }
 0x1ef   : > { %v1274_v29 = vpack.c.bf16 %v805_v28, %v805_v28 }
 0x1f1   : > { %886 = vst.msk [vmem:[%s2029_s28 + $0x34] sm:$0xf] %vm872_vm0, %v1274_v29 }
 0x1f2   : > { %v806_v30 = vpop.trf.xlu0 }
 0x1f3   : > { %v1275_v31 = vpack.c.bf16 %v806_v30, %v806_v30 }
 0x1f5   : > { %887 = vst.msk [vmem:[%s2029_s28 + $0x38] sm:$0xf] %vm872_vm0, %v1275_v31 }
 0x1f6   : > { %v807_v32 = vpop.trf.xlu0 }
 0x1f7   : > { %v1276_v33 = vpack.c.bf16 %v807_v32, %v807_v32 }
 0x1f9   : > { %888 = vst.msk [vmem:[%s2029_s28 + $0x3c] sm:$0xf] %vm872_vm0, %v1276_v33 }
 0x1fa PF: > { %s2117_s24 = sld [smem:[#allocation16_spill]] }
 0x1fb   : > { %s2118_s19 = sld [smem:[#allocation19_spill]] }
 0x1fc   : > { %s2119_s12 = sld [smem:[#allocation18_spill]] }
 0x200   : > { %s994_s27 = sand.u32 1, %s2117_s24  }
 0x201   : > { %p2120_p0 = scmp.ne.s32.totalorder %s2118_s19, 0  ;;  %s995_s29 = scalar_lea.sflag [#allocation4], %s994_s27 }
 0x203   : > { %p1393_p2 = pnand %p1173_p10, %p2120_p0 }
 0x205   : > { %p1394_p6 = pneg %p1393_p2 }
 0x207   : > { %1663 = dma.done.wait (%p1394_p6), %s995_s29, 512  }
 0x208   : > { %1665 = vsyncadd (%p1394_p6), %s995_s29, 4294966784  ;;  %s1015_s9 = scalar_lea.sflag [#allocation10], %s994_s27 }
 0x209   : > { %1667 = dma.done.wait (%p1394_p6), %s1015_s9, 512  }
 0x20a   : > { %1669 = vsyncadd (%p1394_p6), %s1015_s9, 4294966784  ;;  %s29_s26 = sadd.s32 1, %s2119_s12   ;;  %s2121_s14 = sld [smem:[#allocation17_spill]] }
 0x20b   : > { %p26_p9 = scmp.ge.s32.totalorder %s29_s26, 4   ;;  %s2122_s23 = sld [smem:[#allocation21_spill]] }
 0x20c   : > { %s2123_s16 = sld [smem:[#allocation20_spill]]  ;;  %s2124_s21 = smov %s1676_s22 }
 0x20d   : > { %s2126_s24 = smov %s1688_s25 }
 0x20e   :  { %28 = sbr.rel (!%p26_p9) target bundleno = 13 (0xd), region = 127 }
 0x210   : > { %s2125_s22 = smov %s2121_s14 }
 0x212   : > { %s2127_s25 = smov %s2123_s16 }
 0x213   :  { %1020 = vsyncpa [#allocation3], 1 }
 0x214   :  { %1022 = vsyncpa [#allocation3 + $0x1], 1 }
 0x215   :  { %1023 = vsyncpa [#allocation6], 1 }
 0x216   :  { %1025 = vsyncpa [#allocation6 + $0x1], 1 }
 0x217   :  { %1026 = vsyncpa [#allocation4], 1 }
 0x218   :  { %1028 = vsyncpa [#allocation4 + $0x1], 1 }
 0x219   :  { %1029 = vsyncpa [#allocation10], 1 }
 0x21a   :  { %1031 = vsyncpa [#allocation10 + $0x1], 1 }

</bundles_post_ra>
